<compile_context>
chip_gen: v5e
topology: v5e:2x2
jax: 0.10.0
libtpu: 0.0.40
codegen_flags: <defaults>
</compile_context>

<pallas_src>
import jax
import jax.numpy as jnp
from jax.experimental import pallas as pl
from jax.experimental.pallas import tpu as pltpu


def _round_up(v: int, m: int) -> int:
    return (v + m - 1) // m * m


# ----------------------------- kernels --------------------------------------


def _linear_tanh_kernel_single_k(x_ref, w_ref, b_ref, o_ref):
    # x: (tm, K), w: (K, tn) pre-transposed, b: (8, tn) pre-broadcast.
    y = jnp.dot(x_ref[...], w_ref[...], preferred_element_type=jnp.float32)
    o_ref[...] = jnp.tanh(y + b_ref[0:1, :]).astype(o_ref.dtype)


def _linear_tanh_kernel_multi_k(x_ref, w_ref, b_ref, o_ref):
    # Accumulate directly into the K-resident f32 output block (no scratch).
    k = pl.program_id(2)

    @pl.when(k == 0)
    def _():
        o_ref[...] = jnp.zeros_like(o_ref)

    o_ref[...] += jnp.dot(
        x_ref[...], w_ref[...], preferred_element_type=jnp.float32
    )

    @pl.when(k == pl.num_programs(2) - 1)
    def _():
        o_ref[...] = jnp.tanh(o_ref[...] + b_ref[0:1, :]).astype(o_ref.dtype)


# ------------------------- one-time parameter prep --------------------------


def prepare_linear_tanh_params(w, b):
    """One-time prep of PyTorch-style Linear params (hoisted out of forward).

    w: (OUT, IN) float32  -> pre-transposed, padded (INp, OUTp)
    b: (OUT,)    float32  -> pre-broadcast to 8 sublanes, padded (8, OUTp)
    """
    OUT, IN = w.shape
    # Contraction dim: sublane-align only (no 128-lane inflation). For very
    # large IN, align to 512 so a 512-deep K tiling divides evenly.
    INp = _round_up(IN, 8) if IN <= 1024 else _round_up(IN, 512)
    OUTp = _round_up(OUT, 128)

    wT_p = jnp.pad(w.T, ((0, INp - IN), (0, OUTp - OUT)))
    b_p = jnp.pad(
        jnp.broadcast_to(b.reshape(1, OUT), (8, OUT)),
        ((0, 0), (0, OUTp - OUT)),
    )
    return wT_p, b_p, OUT


# ------------------------------- forward ------------------------------------


def linear_tanh(x, params):
    """Computes tanh(x @ w.T + b) using pre-prepared params.

    x: (B, IN) float32; returns (B, OUT) float32.
    """
    wT_p, b_p, OUT = params
    B, IN = x.shape
    INp, OUTp = wT_p.shape

    # Tile sizes: sublane-aligned M, lane-aligned N; K either one full block
    # (small IN, no accumulator needed) or 512-deep tiles.
    tm = min(512, _round_up(B, 8))
    if OUTp % 512 == 0:
        tn = 512
    elif OUTp % 256 == 0:
        tn = 256
    else:
        tn = 128
    tk = INp if INp <= 1024 else 512

    Bp = _round_up(B, tm)
    # Only the activation rows (and IN -> INp, at most +7 cols) get padded in
    # the call path; for large aligned B this is a no-op.
    x_p = x
    if Bp != B or INp != IN:
        x_p = jnp.pad(x, ((0, Bp - B), (0, INp - IN)))

    nm, nn, nk = Bp // tm, OUTp // tn, INp // tk

    if nk == 1:
        grid = (nm, nn)
        in_specs = [
            pl.BlockSpec((tm, tk), lambda i, j: (i, 0)),
            pl.BlockSpec((tk, tn), lambda i, j: (0, j)),
            pl.BlockSpec((8, tn), lambda i, j: (0, j)),
        ]
        out_specs = pl.BlockSpec((tm, tn), lambda i, j: (i, j))
        kernel = _linear_tanh_kernel_single_k
        dims = ("parallel", "parallel")
    else:
        grid = (nm, nn, nk)
        in_specs = [
            pl.BlockSpec((tm, tk), lambda i, j, k: (i, k)),
            pl.BlockSpec((tk, tn), lambda i, j, k: (k, j)),
            pl.BlockSpec((8, tn), lambda i, j, k: (0, j)),
        ]
        out_specs = pl.BlockSpec((tm, tn), lambda i, j, k: (i, j))
        kernel = _linear_tanh_kernel_multi_k
        dims = ("parallel", "parallel", "arbitrary")

    out_padded = pl.pallas_call(
        kernel,
        out_shape=jax.ShapeDtypeStruct((Bp, OUTp), jnp.float32),
        grid_spec=pltpu.PrefetchScalarGridSpec(
            num_scalar_prefetch=0,
            grid=grid,
            in_specs=in_specs,
            out_specs=out_specs,
        ),
        compiler_params=pltpu.CompilerParams(
            dimension_semantics=dims,
            vmem_limit_bytes=32 * 1024 * 1024,
        ),
    )(x_p, wT_p, b_p)

    if Bp != B or OUTp != OUT:
        return out_padded[:B, :OUT]
    return out_padded


if __name__ == "__main__":
    key = jax.random.PRNGKey(0)
    kx, kw, kb = jax.random.split(key, 3)

    B, IN, OUT = 1, 10, 10
    # Input mirrors torch.randn(1, 10)
    x = jax.random.normal(kx, (B, IN), dtype=jnp.float32)

    # Deterministic PyTorch-style Linear init: U(-1/sqrt(IN), 1/sqrt(IN))
    bound = 1.0 / jnp.sqrt(jnp.float32(IN))
    w1 = jax.random.uniform(
        kw, (OUT, IN), minval=-bound, maxval=bound, dtype=jnp.float32
    )
    b1 = jax.random.uniform(
        kb, (OUT,), minval=-bound, maxval=bound, dtype=jnp.float32
    )

    # One-time (init-time) parameter prep, hoisted out of the forward path.
    params = prepare_linear_tanh_params(w1, b1)
    jax.block_until_ready(params)

    out = linear_tanh(x, params)
    jax.block_until_ready(out)

    # Pure-JAX reference check
    ref = jnp.tanh(x @ w1.T + b1)
    assert out.shape == (B, OUT)
    assert jnp.allclose(out, ref, atol=1e-5, rtol=1e-5)

    print("KERNEL_OK")
</pallas_src>

<mosaic_0001>
module attributes {stable_mosaic.version = 11 : i64} {
  func.func @_linear_tanh_kernel_single_k(%arg0: i32, %arg1: i32, %arg2: memref<8x16xf32, #tpu.memory_space<vmem>>, %arg3: memref<16x128xf32, #tpu.memory_space<vmem>>, %arg4: memref<8x128xf32, #tpu.memory_space<vmem>>, %arg5: memref<8x128xf32, #tpu.memory_space<vmem>>) attributes {dimension_semantics = [#tpu.dimension_semantics<parallel>, #tpu.dimension_semantics<parallel>], iteration_bounds = array<i64: 1, 1>, scalar_prefetch = 0 : i64, scratch_operands = 0 : i64, tpu.core_type = #tpu.core_type<tc>, window_params = [{transform_indices = @transform_0, window_bounds = array<i64: 8, 16>}, {transform_indices = @transform_1, window_bounds = array<i64: 16, 128>}, {transform_indices = @transform_2, window_bounds = array<i64: 8, 128>}, {transform_indices = @transform_3, window_bounds = array<i64: 8, 128>}]} {
    %c0 = arith.constant 0 : index
    %c0_0 = arith.constant 0 : index
    %0 = vector.load %arg2[%c0, %c0_0] : memref<8x16xf32, #tpu.memory_space<vmem>>, vector<8x16xf32>
    %c0_1 = arith.constant 0 : index
    %c0_2 = arith.constant 0 : index
    %1 = vector.load %arg3[%c0_1, %c0_2] : memref<16x128xf32, #tpu.memory_space<vmem>>, vector<16x128xf32>
    %cst = arith.constant dense<0.000000e+00> : vector<8x128xf32>
    %2 = tpu.matmul %0, %1, %cst {dimension_numbers = #tpu.dot_dimension_numbers<[1], [0], [0], [1], [0, 0, 1, 1], [], []>} : vector<8x16xf32>, vector<16x128xf32>, vector<8x128xf32> -> vector<8x128xf32>
    %c0_3 = arith.constant 0 : index
    %c0_4 = arith.constant 0 : index
    %3 = vector.load %arg4[%c0_3, %c0_4] : memref<8x128xf32, #tpu.memory_space<vmem>>, vector<1x128xf32>
    %4 = vector.broadcast %3 : vector<1x128xf32> to vector<8x128xf32>
    %5 = arith.addf %2, %4 : vector<8x128xf32>
    %6 = math.tanh %5 : vector<8x128xf32>
    %c0_5 = arith.constant 0 : index
    %c0_6 = arith.constant 0 : index
    %7 = vector.load %arg5[%c0_5, %c0_6] : memref<8x128xf32, #tpu.memory_space<vmem>>, vector<8x128xf32>
    tpu.vector_store %arg5[%c0_5, %c0_6], %6 {strides = array<i32>} : memref<8x128xf32, #tpu.memory_space<vmem>>, vector<8x128xf32>,
    return
  }
  func.func @transform_0(%arg0: i32, %arg1: i32) -> (i32, i32) {
    %c0_i32 = arith.constant 0 : i32
    %c0_i32_0 = arith.constant 0 : i32
    return %arg0, %c0_i32 : i32, i32
  }
  func.func @transform_1(%arg0: i32, %arg1: i32) -> (i32, i32) {
    %c0_i32 = arith.constant 0 : i32
    %c0_i32_0 = arith.constant 0 : i32
    return %c0_i32, %arg1 : i32, i32
  }
  func.func @transform_2(%arg0: i32, %arg1: i32) -> (i32, i32) {
    %c0_i32 = arith.constant 0 : i32
    %c0_i32_0 = arith.constant 0 : i32
    return %c0_i32, %arg1 : i32, i32
  }
  func.func @transform_3(%arg0: i32, %arg1: i32) -> (i32, i32) {
    %c0_i32 = arith.constant 0 : i32
    return %arg0, %arg1 : i32, i32
  }
}

</mosaic_0001>

<bundles_post_ra>
// kernel: tpu_custom_call.1
= control target key start
LH: loop header
LB: loop body
LE: loop exit
PB: predicated region body
PF: predicated region fallthrough
CT: control target
= control target key end

     0   :  { %8 = vsyncpa [#allocation3], 0  ;;  %s257_s0 = inlined_call_operand.hbm [shape: f32[8,16], index: 0, kind: input, shape index: {}]   ;;  %s258_s1 = inlined_call_operand.hbm [shape: f32[16,128], index: 1, kind: input, shape index: {}]   ;;  %s259_s2 = inlined_call_operand.hbm [shape: f32[8,128], index: 2, kind: input, shape index: {}]   ;;  %s260_s3 = inlined_call_operand.hbm [shape: f32[8,128], index: 3, kind: output, shape index: {}]  }
   0x1   :  { %9 = vsyncpa [#allocation6], 0  ;;  %s26_s14 = sshll.u32 %s258_s1, 4  ;;  %s27_s14 = int_to_ptr.hbm [resolvable:$true] %s26_s14 }
   0x2   :  { %10 = vsyncpa [#allocation4], 0  ;;  %s219_s15 = smov [#allocation5]   ;;  %s16_s19 = sshll.u32 %s257_s0, 4  ;;  %s17_s19 = int_to_ptr.hbm [resolvable:$true] %s16_s19 }
   0x3   :  { %s28_s16 = sshll.u32 %s219_s15, 4  ;;  %s220_s20 = smov 128   ;;  %s29_s16 = int_to_ptr.vmem [resolvable:$true] %s28_s16 }
   0x4   :  { %s221_s21 = smov 8   ;;  %s222_s22 = smov [#allocation2]  }
   0x5   :  { %34 = dma.hbm_to_vmem [thread:$0]  %s27_s14, 256, %s29_s16, [#allocation6], %s220_s20, %s220_s20, %s221_s21  }
   0x6   :  { %s18_s23 = sshll.u32 %s222_s22, 4  ;;  %s40_s26 = sshll.u32 %s259_s2, 4  ;;  %s19_s23 = int_to_ptr.vmem [resolvable:$true] %s18_s23  ;;  %s41_s26 = int_to_ptr.hbm [resolvable:$true] %s40_s26 }
   0x7   :  { %21 = dma.hbm_to_vmem [thread:$0]  %s17_s19, 128, %s19_s23, [#allocation3]  }
   0x8   :  { %s223_s1 = smov [#allocation7]  }
   0x9   :  { %s42_s27 = sshll.u32 %s223_s1, 4  ;;  %s43_s27 = int_to_ptr.vmem [resolvable:$true] %s42_s27 }
   0xa   :  { %45 = dma.hbm_to_vmem [thread:$0]  %s41_s26, 128, %s43_s27, [#allocation6]  }
   0xb   :  { %213 = dma.done.wait [#allocation3], 128  }
   0xc   :  { %214 = vsyncadd [#allocation3], 4294967168 }
   0xd   :  { %215 = dma.done.wait [#allocation6], 384  }
   0xe   :  { %216 = vsyncadd [#allocation6], 4294966912  ;;  %v60_v0 = vld [vmem:[#allocation5 + $0x8] sm:$0xff]  ;;  %v59_v1 = vld [vmem:[#allocation5] sm:$0xff]  ;;  %vm63_vm0 = vcmask 130048   ;;  %s224_s0 = smov [#allocation8]  }
   0xf   :  { %81 = vmatpush.msra.mxu0 %v60_v0  ;;  %v58_v2 = vld [vmem:[#allocation2] sm:$0xff]  ;;  %v114_v3 = vld [vmem:[#allocation7] ss:$0 sm:$0xff]  ;;  %s94_s2 = sshll.u32 %s224_s0, 4  ;;  %s96_s30 = sshll.u32 %s260_s3, 4  ;;  %s95_s2 = int_to_ptr.vmem [resolvable:$true] %s94_s2  ;;  %s97_s30 = int_to_ptr.hbm [resolvable:$true] %s96_s30 }
  0x11   :  { %82 = vmatpush.msra.mxu0 %v59_v1 }
  0x12   :  { %107 = vmatmul.msk.f32.vlgmr.msra.gmra.mxu0 %vm63_vm0, %v58_v2 }
  0x8f   :  { %v84_v4 = vpop.f32.mrf.mxu0 }
  0x90   :  { %v85_v5 = vadd.f32 %v114_v3, %v84_v4 }
  0x92   :  { %115 = vtanh.f32 %v85_v5 }
  0x98   :  { %v116_v6 = vpop.eup %115 }
  0x99   :  { %88 = vst [vmem:[#allocation8] sm:$0xff] %v116_v6 }
  0x9a   :  { %99 = dma.vmem_to_hbm [thread:$0]  %s95_s2, 128, %s97_s30, [#allocation4]  }
  0x9b   :  { %217 = dma.done.wait [#allocation4], 128  }
  0x9c   :  { %218 = vsyncadd [#allocation4], 4294967168 }
  0x9d   :  { %104 = vsyncpa [#allocation3], 1 }
  0x9e   :  { %105 = vsyncpa [#allocation6], 1 }
  0x9f   :  { %106 = vsyncpa [#allocation4], 1 }

</bundles_post_ra>
